<compile_context>
chip_gen: v6e
topology: v6e:2x2x1
jax: 0.10.0
libtpu: 0.0.40
codegen_flags: <defaults>
</compile_context>

<pallas_src>
import math

import jax
import jax.numpy as jnp
from jax.experimental import pallas as pl
from jax.experimental.pallas import tpu as pltpu

INPUT_SIZE = 3 * 64 * 64   # 12288
OUTPUT_SIZE = 6
MAX_TILE_B = 256           # sized for v7x's 64 MiB VMEM; also fine on v5e/v6e


def _round_up(x, m):
    return ((x + m - 1) // m) * m


def linear_kernel(x_ref, w_ref, b_ref, o_ref):
    # x_ref: (TILE_B, 12288) VMEM
    # w_ref: (6, 12288)      VMEM (lane-dense, resident across grid steps)
    # b_ref: (1, 6)          VMEM
    # o_ref: (TILE_B, 6)     VMEM
    acc = jax.lax.dot_general(
        x_ref[...], w_ref[...],
        dimension_numbers=(((1,), (1,)), ((), ())),   # contract K of x with K of W
        preferred_element_type=jnp.float32,
    )
    o_ref[...] = (acc + b_ref[...]).astype(o_ref.dtype)


def linear_classifier_forward(x_nchw, weight, bias):
    """x_nchw: (B,3,64,64) f32, weight: (6,12288) f32, bias: (6,) f32 -> (B,6) f32."""
    B = x_nchw.shape[0]
    # Flatten exactly like torch's x.view(B, -1) on NCHW-contiguous data.
    x2d = x_nchw.reshape(B, INPUT_SIZE)
    b2d = bias.reshape(1, OUTPUT_SIZE)

    # Tile the batch axis; keep every tile (8,128)-aligned by padding B.
    tile_b = min(MAX_TILE_B, _round_up(B, 8))
    b_padded = _round_up(B, tile_b)
    if b_padded != B:
        x2d = jnp.pad(x2d, ((0, b_padded - B), (0, 0)))

    grid = (pl.cdiv(b_padded, tile_b),)

    cost = pl.CostEstimate(
        flops=2 * b_padded * INPUT_SIZE * OUTPUT_SIZE,
        transcendentals=0,
        bytes_accessed=(b_padded * INPUT_SIZE * 4
                        + INPUT_SIZE * OUTPUT_SIZE * 4
                        + b_padded * OUTPUT_SIZE * 4),
    )

    out_padded = pl.pallas_call(
        linear_kernel,
        out_shape=jax.ShapeDtypeStruct((b_padded, OUTPUT_SIZE), x2d.dtype),
        grid=grid,
        in_specs=[
            pl.BlockSpec((tile_b, INPUT_SIZE), lambda i: (i, 0)),        # streamed x tiles
            pl.BlockSpec((OUTPUT_SIZE, INPUT_SIZE), lambda i: (0, 0)),   # resident weight
            pl.BlockSpec((1, OUTPUT_SIZE), lambda i: (0, 0)),            # resident bias
        ],
        out_specs=pl.BlockSpec((tile_b, OUTPUT_SIZE), lambda i: (i, 0)),
        compiler_params=pltpu.CompilerParams(
            dimension_semantics=("parallel",),
            vmem_limit_bytes=48 << 20,
        ),
        cost_estimate=cost,
    )(x2d, weight, b2d)

    return out_padded[:B]


def init_params(key):
    """Deterministic init matching torch.nn.Linear's default (uniform +/- 1/sqrt(fan_in))."""
    k_w, k_b = jax.random.split(key)
    bound = 1.0 / math.sqrt(INPUT_SIZE)
    weight = jax.random.uniform(
        k_w, (OUTPUT_SIZE, INPUT_SIZE), jnp.float32, minval=-bound, maxval=bound
    )
    bias = jax.random.uniform(
        k_b, (OUTPUT_SIZE,), jnp.float32, minval=-bound, maxval=bound
    )
    return weight, bias


if __name__ == "__main__":
    key = jax.random.PRNGKey(0)
    k_x, k_p = jax.random.split(key)

    B = 2
    x = jax.random.normal(k_x, (B, 3, 64, 64), jnp.float32)
    weight, bias = init_params(k_p)

    out = linear_classifier_forward(x, weight, bias)
    out = jax.block_until_ready(out)

    # Cross-check against plain-JAX reference of the same math.
    ref = x.reshape(B, -1) @ weight.T + bias
    assert out.shape == (B, OUTPUT_SIZE)
    assert jnp.allclose(out, ref, atol=1e-4, rtol=1e-4)

    print("KERNEL_OK")
</pallas_src>

<mosaic_0001>
module attributes {stable_mosaic.version = 11 : i64} {
  func.func @linear_kernel(%arg0: i32, %arg1: memref<8x12288xf32, #tpu.memory_space<vmem>>, %arg2: memref<6x12288xf32, #tpu.memory_space<vmem>>, %arg3: memref<1x6xf32, #tpu.memory_space<vmem>>, %arg4: memref<8x6xf32, #tpu.memory_space<vmem>>) attributes {dimension_semantics = [#tpu.dimension_semantics<parallel>], iteration_bounds = array<i64: 1>, scalar_prefetch = 0 : i64, scratch_operands = 0 : i64, tpu.core_type = #tpu.core_type<tc>, window_params = [{transform_indices = @transform_0, window_bounds = array<i64: 8, 12288>}, {pipeline_mode = #tpu.pipeline_mode<synchronous>, transform_indices = @transform_1, window_bounds = array<i64: 6, 12288>}, {pipeline_mode = #tpu.pipeline_mode<synchronous>, transform_indices = @transform_2, window_bounds = array<i64: 1, 6>}, {transform_indices = @transform_3, window_bounds = array<i64: 8, 6>}]} {
    %c0 = arith.constant 0 : index
    %c0_0 = arith.constant 0 : index
    %0 = vector.load %arg1[%c0, %c0_0] : memref<8x12288xf32, #tpu.memory_space<vmem>>, vector<8x12288xf32>
    %c0_1 = arith.constant 0 : index
    %c0_2 = arith.constant 0 : index
    %1 = vector.load %arg2[%c0_1, %c0_2] : memref<6x12288xf32, #tpu.memory_space<vmem>>, vector<6x12288xf32>
    %cst = arith.constant dense<0.000000e+00> : vector<8x6xf32>
    %2 = tpu.matmul %0, %1, %cst {dimension_numbers = #tpu.dot_dimension_numbers<[1], [1], [0], [0], [0, 0, 1, 0], [], []>} : vector<8x12288xf32>, vector<6x12288xf32>, vector<8x6xf32> -> vector<8x6xf32>
    %c0_3 = arith.constant 0 : index
    %c0_4 = arith.constant 0 : index
    %3 = vector.load %arg3[%c0_3, %c0_4] : memref<1x6xf32, #tpu.memory_space<vmem>>, vector<1x6xf32>
    %4 = vector.broadcast %3 : vector<1x6xf32> to vector<8x6xf32>
    %5 = arith.addf %2, %4 : vector<8x6xf32>
    %c0_5 = arith.constant 0 : index
    %c0_6 = arith.constant 0 : index
    %6 = vector.load %arg4[%c0_5, %c0_6] : memref<8x6xf32, #tpu.memory_space<vmem>>, vector<8x6xf32>
    tpu.vector_store %arg4[%c0_5, %c0_6], %5 {strides = array<i32>} : memref<8x6xf32, #tpu.memory_space<vmem>>, vector<8x6xf32>,
    return
  }
  func.func @transform_0(%arg0: i32) -> (i32, i32) {
    %c0_i32 = arith.constant 0 : i32
    %c0_i32_0 = arith.constant 0 : i32
    return %arg0, %c0_i32 : i32, i32
  }
  func.func @transform_1(%arg0: i32) -> (i32, i32) {
    %c0_i32 = arith.constant 0 : i32
    %c0_i32_0 = arith.constant 0 : i32
    %c0_i32_1 = arith.constant 0 : i32
    return %c0_i32, %c0_i32_0 : i32, i32
  }
  func.func @transform_2(%arg0: i32) -> (i32, i32) {
    %c0_i32 = arith.constant 0 : i32
    %c0_i32_0 = arith.constant 0 : i32
    %c0_i32_1 = arith.constant 0 : i32
    return %c0_i32, %c0_i32_0 : i32, i32
  }
  func.func @transform_3(%arg0: i32) -> (i32, i32) {
    %c0_i32 = arith.constant 0 : i32
    %c0_i32_0 = arith.constant 0 : i32
    return %arg0, %c0_i32 : i32, i32
  }
}

</mosaic_0001>

<bundles_post_ra>
// kernel: tpu_custom_call.1
= control target key start
LH: loop header
LB: loop body
LE: loop exit
PB: predicated region body
PF: predicated region fallthrough
CT: control target
= control target key end

     0   :  { %8 = vsyncpa [#allocation3], 0  ;;  %s3721_s0 = inlined_call_operand.hbm [shape: f32[8,12288], index: 0, kind: input, shape index: {}]   ;;  %s3722_s1 = inlined_call_operand.hbm [shape: f32[6,12288], index: 1, kind: input, shape index: {}]   ;;  %s3723_s2 = inlined_call_operand.vmem [shape: f32[1,6], index: 2, kind: input, shape index: {}]   ;;  %s3724_s3 = inlined_call_operand.hbm [shape: f32[8,6], index: 3, kind: output, shape index: {}]  }
   0x1   :  { %9 = vsyncpa [#allocation6], 0 }
   0x2   :  { %10 = vsyncpa [#allocation4], 0  ;;  %s3686_s12 = smov [#allocation2]   ;;  %s3687_s14 = smov [#allocation5]  }
   0x3   :  { %s17_s13 = sshll.u32 %s3686_s12, 4  ;;  %s27_s15 = sshll.u32 %s3687_s14, 4  ;;  %s18_s13 = int_to_ptr.vmem [resolvable:$true] %s17_s13  ;;  %s28_s15 = int_to_ptr.vmem [resolvable:$true] %s27_s15 }
   0x4   :  { %s3628_s16 = scalar_lea.vmem %s18_s13, 12288  ;;  %p3633_p1 = scmp.lt.s32.totalorder %s18_s13, %s18_s13 }
   0x5   :  { %p3629_p0 = scmp.ne.s32.totalorder %s18_s13, %s3628_s16  ;;  %p3634_p2 = scmp.lt.s32.totalorder %s3628_s16, %s3628_s16 }
   0x7   :  { %p3635_p3 = por %p3634_p2, %p3633_p1 }
   0x9   :  { %p3636_p4 = pnand %p3635_p3, %p3629_p0 }
   0xb   :  { %3639 = shalt.err (!%p3636_p4)
}
   0xc   :  { %20 = dma.hbm_to_vmem [thread:$0]  %s3721_s0, 12288, %s18_s13, [#allocation3]  }
   0xd   :  { %s3648_s19 = scalar_lea.vmem %s28_s15, 12288  ;;  %p3653_p6 = scmp.lt.s32.totalorder %s28_s15, %s28_s15 }
   0xe   :  { %p3649_p5 = scmp.ne.s32.totalorder %s28_s15, %s3648_s19  ;;  %p3654_p7 = scmp.lt.s32.totalorder %s3648_s19, %s3648_s19 }
  0x10   :  { %p3655_p8 = por %p3654_p7, %p3653_p6 }
  0x12   :  { %p3656_p9 = pnand %p3655_p8, %p3649_p5 }
  0x14   :  { %3659 = shalt.err (!%p3656_p9)
}
  0x15   :  { %30 = dma.hbm_to_vmem [thread:$0]  %s3722_s1, 12288, %s28_s15, [#allocation6]  }
  0x16   :  { %3680 = dma.done.wait [#allocation3], 12288  }
  0x17   :  { %3681 = vsyncadd [#allocation3], 4294955008 }
  0x18   :  { %3682 = dma.done.wait [#allocation6], 12288  }
  0x19   :  { %3683 = vsyncadd [#allocation6], 4294955008  ;;  %v136_v0 = vld [vmem:[#allocation5 + $0x8] sm:$0x3f]  ;;  %v135_v1 = vld [vmem:[#allocation5] sm:$0x3f] }
  0x1a   :  { %v138_v2 = vld [vmem:[#allocation5 + $0x18] sm:$0x3f]  ;;  %268 = vmatprep.subr.mxu0 %v136_v0  ;;  %v137_v3 = vld [vmem:[#allocation5 + $0x10] sm:$0x3f]  ;;  %v40_v4 = vld [vmem:[#allocation2 + $0x8] sm:$0xff]  ;;  %vm3598_vm0 = vcmask 48128  }
  0x1b   :  { %338 = vmatprep.subr.mxu1 %v138_v2  ;;  %v39_v5 = vld [vmem:[#allocation2] sm:$0xff]  ;;  %269 = vmatpush1.xpose.msra.mxu0 %v135_v1  ;;  %v42_v6 = vld [vmem:[#allocation2 + $0x18] sm:$0xff]  ;;  %v140_v7 = vld [vmem:[#allocation5 + $0x28] sm:$0x3f] }
  0x1c   :  { %339 = vmatpush1.xpose.msra.mxu1 %v137_v3  ;;  %v41_v8 = vld [vmem:[#allocation2 + $0x10] sm:$0xff]  ;;  %302 = vmatprep.mubr.f32.mxu0 %v40_v4  ;;  %v139_v9 = vld [vmem:[#allocation5 + $0x20] sm:$0x3f]  ;;  %v142_v10 = vld [vmem:[#allocation5 + $0x38] sm:$0x3f] }
  0x1d   :  { %372 = vmatprep.mubr.f32.mxu1 %v42_v6  ;;  %v141_v11 = vld [vmem:[#allocation5 + $0x30] sm:$0x3f]  ;;  %408 = vmatprep.subr.mxu0 %v140_v7  ;;  %v44_v12 = vld [vmem:[#allocation2 + $0x28] sm:$0xff]  ;;  %v46_v13 = vld [vmem:[#allocation2 + $0x38] sm:$0xff] }
  0x1e   :  { %478 = vmatprep.subr.mxu1 %v142_v10  ;;  %303 = vmatmul.mubr.f32.vlgmr.msra.gmra.mxu0 %v39_v5  ;;  %v144_v14 = vld [vmem:[#allocation5 + $0x48] sm:$0x3f]  ;;  %v43_v15 = vld [vmem:[#allocation2 + $0x20] sm:$0xff]  ;;  %v45_v16 = vld [vmem:[#allocation2 + $0x30] sm:$0xff] }
  0x1f   :  { %373 = vmatmul.mubr.f32.vlgmr.msra.gmra.mxu1 %v41_v8  ;;  %409 = vmatpush1.xpose.msra.mxu0 %v139_v9  ;;  %v146_v17 = vld [vmem:[#allocation5 + $0x58] sm:$0x3f]  ;;  %v143_v18 = vld [vmem:[#allocation5 + $0x40] sm:$0x3f]  ;;  %v145_v19 = vld [vmem:[#allocation5 + $0x50] sm:$0x3f] }
  0x20   :  { %479 = vmatpush1.xpose.msra.mxu1 %v141_v11  ;;  %442 = vmatprep.mubr.f32.mxu0 %v44_v12  ;;  %v48_v20 = vld [vmem:[#allocation2 + $0x48] sm:$0xff]  ;;  %v50_v21 = vld [vmem:[#allocation2 + $0x58] sm:$0xff]  ;;  %v47_v24 = vld [vmem:[#allocation2 + $0x40] sm:$0xff] }
  0x21   :  { %512 = vmatprep.mubr.f32.mxu1 %v46_v13  ;;  %548 = vmatprep.subr.mxu0 %v144_v14  ;;  %v148_v22 = vld [vmem:[#allocation5 + $0x68] sm:$0x3f]  ;;  %v150_v23 = vld [vmem:[#allocation5 + $0x78] sm:$0x3f]  ;;  %v49_v25 = vld [vmem:[#allocation2 + $0x50] sm:$0xff] }
  0x22   :  { %618 = vmatprep.subr.mxu1 %v146_v17  ;;  %443 = vmatmul.mubr.f32.vlgmr.msra.gmra.mxu0 %v43_v15  ;;  %v147_v26 = vld [vmem:[#allocation5 + $0x60] sm:$0x3f]  ;;  %v149_v27 = vld [vmem:[#allocation5 + $0x70] sm:$0x3f]  ;;  %v52_v28 = vld [vmem:[#allocation2 + $0x68] sm:$0xff] }
  0x23   :  { %513 = vmatmul.mubr.f32.vlgmr.msra.gmra.mxu1 %v45_v16  ;;  %549 = vmatpush1.xpose.msra.mxu0 %v143_v18  ;;  %v54_v29 = vld [vmem:[#allocation2 + $0x78] sm:$0xff]  ;;  %v152_v30 = vld [vmem:[#allocation5 + $0x88] sm:$0x3f]  ;;  %v51_v32 = vld [vmem:[#allocation2 + $0x60] sm:$0xff] }
  0x24   :  { %619 = vmatpush1.xpose.msra.mxu1 %v145_v19  ;;  %582 = vmatprep.mubr.f32.mxu0 %v48_v20  ;;  %v154_v31 = vld [vmem:[#allocation5 + $0x98] sm:$0x3f]  ;;  %v53_v33 = vld [vmem:[#allocation2 + $0x70] sm:$0xff]  ;;  %v151_v34 = vld [vmem:[#allocation5 + $0x80] sm:$0x3f] }
  0x25   :  { %652 = vmatprep.mubr.f32.mxu1 %v50_v21  ;;  %688 = vmatprep.subr.mxu0 %v148_v22  ;;  %v153_v35 = vld [vmem:[#allocation5 + $0x90] sm:$0x3f]  ;;  %v56_v36 = vld [vmem:[#allocation2 + $0x88] sm:$0xff]  ;;  %v58_v37 = vld [vmem:[#allocation2 + $0x98] sm:$0xff] }
  0x26   :  { %758 = vmatprep.subr.mxu1 %v150_v23  ;;  %583 = vmatmul.mubr.f32.vlgmr.msra.gmra.mxu0 %v47_v24  ;;  %v156_v38 = vld [vmem:[#allocation5 + $0xa8] sm:$0x3f]  ;;  %v158_v39 = vld [vmem:[#allocation5 + $0xb8] sm:$0x3f]  ;;  %v55_v40 = vld [vmem:[#allocation2 + $0x80] sm:$0xff] }
  0x27   :  { %653 = vmatmul.mubr.f32.vlgmr.msra.gmra.mxu1 %v49_v25  ;;  %689 = vmatpush1.xpose.msra.mxu0 %v147_v26  ;;  %v57_v41 = vld [vmem:[#allocation2 + $0x90] sm:$0xff]  ;;  %v155_v42 = vld [vmem:[#allocation5 + $0xa0] sm:$0x3f]  ;;  %v60_v44 = vld [vmem:[#allocation2 + $0xa8] sm:$0xff] }
  0x28   :  { %759 = vmatpush1.xpose.msra.mxu1 %v149_v27  ;;  %722 = vmatprep.mubr.f32.mxu0 %v52_v28  ;;  %v157_v43 = vld [vmem:[#allocation5 + $0xb0] sm:$0x3f]  ;;  %v62_v45 = vld [vmem:[#allocation2 + $0xb8] sm:$0xff]  ;;  %v160_v46 = vld [vmem:[#allocation5 + $0xc8] sm:$0x3f] }
  0x29   :  { %792 = vmatprep.mubr.f32.mxu1 %v54_v29  ;;  %828 = vmatprep.subr.mxu0 %v152_v30  ;;  %v162_v47 = vld [vmem:[#allocation5 + $0xd8] sm:$0x3f]  ;;  %v59_v48 = vld [vmem:[#allocation2 + $0xa0] sm:$0xff]  ;;  %v61_v49 = vld [vmem:[#allocation2 + $0xb0] sm:$0xff] }
  0x2a   :  { %898 = vmatprep.subr.mxu1 %v154_v31  ;;  %723 = vmatmul.mubr.f32.vlgmr.msra.gmra.mxu0 %v51_v32  ;;  %v159_v50 = vld [vmem:[#allocation5 + $0xc0] sm:$0x3f]  ;;  %v161_v51 = vld [vmem:[#allocation5 + $0xd0] sm:$0x3f]  ;;  %v64_v52 = vld [vmem:[#allocation2 + $0xc8] sm:$0xff] }
  0x2b   :  { %793 = vmatmul.mubr.f32.vlgmr.msra.gmra.mxu1 %v53_v33  ;;  %829 = vmatpush1.xpose.msra.mxu0 %v151_v34  ;;  %v66_v53 = vld [vmem:[#allocation2 + $0xd8] sm:$0xff]  ;;  %v164_v54 = vld [vmem:[#allocation5 + $0xe8] sm:$0x3f]  ;;  %v63_v56 = vld [vmem:[#allocation2 + $0xc0] sm:$0xff] }
  0x2c   :  { %899 = vmatpush1.xpose.msra.mxu1 %v153_v35  ;;  %862 = vmatprep.mubr.f32.mxu0 %v56_v36  ;;  %v166_v55 = vld [vmem:[#allocation5 + $0xf8] sm:$0x3f]  ;;  %v65_v57 = vld [vmem:[#allocation2 + $0xd0] sm:$0xff]  ;;  %v163_v58 = vld [vmem:[#allocation5 + $0xe0] sm:$0x3f] }
  0x2d   :  { %932 = vmatprep.mubr.f32.mxu1 %v58_v37  ;;  %968 = vmatprep.subr.mxu0 %v156_v38  ;;  %v165_v59 = vld [vmem:[#allocation5 + $0xf0] sm:$0x3f]  ;;  %v68_v60 = vld [vmem:[#allocation2 + $0xe8] sm:$0xff]  ;;  %v70_v61 = vld [vmem:[#allocation2 + $0xf8] sm:$0xff] }
  0x2e   :  { %1038 = vmatprep.subr.mxu1 %v158_v39  ;;  %863 = vmatmul.mubr.f32.vlgmr.msra.gmra.mxu0 %v55_v40  ;;  %v168_v62 = vld [vmem:[#allocation5 + $0x108] sm:$0x3f]  ;;  %v170_v63 = vld [vmem:[#allocation5 + $0x118] sm:$0x3f]  ;;  %v67_v0 = vld [vmem:[#allocation2 + $0xe0] sm:$0xff] }
  0x2f   :  { %933 = vmatmul.mubr.f32.vlgmr.msra.gmra.mxu1 %v57_v41  ;;  %969 = vmatpush1.xpose.msra.mxu0 %v155_v42  ;;  %v69_v1 = vld [vmem:[#allocation2 + $0xf0] sm:$0xff]  ;;  %v167_v2 = vld [vmem:[#allocation5 + $0x100] sm:$0x3f]  ;;  %v72_v4 = vld [vmem:[#allocation2 + $0x108] sm:$0xff] }
  0x30   :  { %1039 = vmatpush1.xpose.msra.mxu1 %v157_v43  ;;  %1002 = vmatprep.mubr.f32.mxu0 %v60_v44  ;;  %v169_v3 = vld [vmem:[#allocation5 + $0x110] sm:$0x3f]  ;;  %v74_v5 = vld [vmem:[#allocation2 + $0x118] sm:$0xff]  ;;  %v172_v6 = vld [vmem:[#allocation5 + $0x128] sm:$0x3f] }
  0x31   :  { %1072 = vmatprep.mubr.f32.mxu1 %v62_v45  ;;  %1108 = vmatprep.subr.mxu0 %v160_v46  ;;  %v174_v7 = vld [vmem:[#allocation5 + $0x138] sm:$0x3f]  ;;  %v71_v8 = vld [vmem:[#allocation2 + $0x100] sm:$0xff]  ;;  %v73_v9 = vld [vmem:[#allocation2 + $0x110] sm:$0xff] }
  0x32   :  { %1178 = vmatprep.subr.mxu1 %v162_v47  ;;  %1003 = vmatmul.mubr.f32.vlgmr.msra.gmra.mxu0 %v59_v48  ;;  %v171_v10 = vld [vmem:[#allocation5 + $0x120] sm:$0x3f]  ;;  %v173_v11 = vld [vmem:[#allocation5 + $0x130] sm:$0x3f]  ;;  %v76_v12 = vld [vmem:[#allocation2 + $0x128] sm:$0xff] }
  0x33   :  { %1073 = vmatmul.mubr.f32.vlgmr.msra.gmra.mxu1 %v61_v49  ;;  %1109 = vmatpush1.xpose.msra.mxu0 %v159_v50  ;;  %v78_v13 = vld [vmem:[#allocation2 + $0x138] sm:$0xff]  ;;  %v176_v14 = vld [vmem:[#allocation5 + $0x148] sm:$0x3f]  ;;  %v75_v16 = vld [vmem:[#allocation2 + $0x120] sm:$0xff] }
  0x34   :  { %1179 = vmatpush1.xpose.msra.mxu1 %v161_v51  ;;  %1142 = vmatprep.mubr.f32.mxu0 %v64_v52  ;;  %v178_v15 = vld [vmem:[#allocation5 + $0x158] sm:$0x3f]  ;;  %v77_v17 = vld [vmem:[#allocation2 + $0x130] sm:$0xff]  ;;  %v175_v18 = vld [vmem:[#allocation5 + $0x140] sm:$0x3f] }
  0x35   :  { %1212 = vmatprep.mubr.f32.mxu1 %v66_v53  ;;  %1248 = vmatprep.subr.mxu0 %v164_v54  ;;  %v177_v19 = vld [vmem:[#allocation5 + $0x150] sm:$0x3f]  ;;  %v80_v20 = vld [vmem:[#allocation2 + $0x148] sm:$0xff]  ;;  %v82_v21 = vld [vmem:[#allocation2 + $0x158] sm:$0xff] }
  0x36   :  { %1318 = vmatprep.subr.mxu1 %v166_v55  ;;  %1143 = vmatmul.mubr.f32.vlgmr.msra.gmra.mxu0 %v63_v56  ;;  %v180_v22 = vld [vmem:[#allocation5 + $0x168] sm:$0x3f]  ;;  %v182_v23 = vld [vmem:[#allocation5 + $0x178] sm:$0x3f]  ;;  %v79_v24 = vld [vmem:[#allocation2 + $0x140] sm:$0xff] }
  0x37   :  { %1213 = vmatmul.mubr.f32.vlgmr.msra.gmra.mxu1 %v65_v57  ;;  %1249 = vmatpush1.xpose.msra.mxu0 %v163_v58  ;;  %v81_v25 = vld [vmem:[#allocation2 + $0x150] sm:$0xff]  ;;  %v179_v26 = vld [vmem:[#allocation5 + $0x160] sm:$0x3f]  ;;  %v84_v28 = vld [vmem:[#allocation2 + $0x168] sm:$0xff] }
  0x38   :  { %1319 = vmatpush1.xpose.msra.mxu1 %v165_v59  ;;  %1282 = vmatprep.mubr.f32.mxu0 %v68_v60  ;;  %v181_v27 = vld [vmem:[#allocation5 + $0x170] sm:$0x3f]  ;;  %v86_v29 = vld [vmem:[#allocation2 + $0x178] sm:$0xff]  ;;  %v184_v30 = vld [vmem:[#allocation5 + $0x188] sm:$0x3f] }
  0x39   :  { %1352 = vmatprep.mubr.f32.mxu1 %v70_v61  ;;  %1388 = vmatprep.subr.mxu0 %v168_v62  ;;  %v186_v31 = vld [vmem:[#allocation5 + $0x198] sm:$0x3f]  ;;  %v83_v32 = vld [vmem:[#allocation2 + $0x160] sm:$0xff]  ;;  %v85_v33 = vld [vmem:[#allocation2 + $0x170] sm:$0xff] }
  0x3a   :  { %1458 = vmatprep.subr.mxu1 %v170_v63  ;;  %1283 = vmatmul.mubr.f32.vlgmr.msra.gmra.mxu0 %v67_v0  ;;  %v183_v34 = vld [vmem:[#allocation5 + $0x180] sm:$0x3f]  ;;  %v185_v35 = vld [vmem:[#allocation5 + $0x190] sm:$0x3f]  ;;  %v88_v36 = vld [vmem:[#allocation2 + $0x188] sm:$0xff] }
  0x3b   :  { %1353 = vmatmul.mubr.f32.vlgmr.msra.gmra.mxu1 %v69_v1  ;;  %1389 = vmatpush1.xpose.msra.mxu0 %v167_v2  ;;  %v90_v37 = vld [vmem:[#allocation2 + $0x198] sm:$0xff]  ;;  %v188_v38 = vld [vmem:[#allocation5 + $0x1a8] sm:$0x3f]  ;;  %v87_v40 = vld [vmem:[#allocation2 + $0x180] sm:$0xff] }
  0x3c   :  { %1459 = vmatpush1.xpose.msra.mxu1 %v169_v3  ;;  %1422 = vmatprep.mubr.f32.mxu0 %v72_v4  ;;  %v190_v39 = vld [vmem:[#allocation5 + $0x1b8] sm:$0x3f]  ;;  %v89_v41 = vld [vmem:[#allocation2 + $0x190] sm:$0xff]  ;;  %v187_v42 = vld [vmem:[#allocation5 + $0x1a0] sm:$0x3f] }
  0x3d   :  { %1492 = vmatprep.mubr.f32.mxu1 %v74_v5  ;;  %1528 = vmatprep.subr.mxu0 %v172_v6  ;;  %v189_v43 = vld [vmem:[#allocation5 + $0x1b0] sm:$0x3f]  ;;  %v92_v44 = vld [vmem:[#allocation2 + $0x1a8] sm:$0xff]  ;;  %v94_v45 = vld [vmem:[#allocation2 + $0x1b8] sm:$0xff] }
  0x3e   :  { %1598 = vmatprep.subr.mxu1 %v174_v7  ;;  %1423 = vmatmul.mubr.f32.vlgmr.msra.gmra.mxu0 %v71_v8  ;;  %v192_v46 = vld [vmem:[#allocation5 + $0x1c8] sm:$0x3f]  ;;  %v194_v47 = vld [vmem:[#allocation5 + $0x1d8] sm:$0x3f]  ;;  %v91_v48 = vld [vmem:[#allocation2 + $0x1a0] sm:$0xff] }
  0x3f   :  { %1493 = vmatmul.mubr.f32.vlgmr.msra.gmra.mxu1 %v73_v9  ;;  %1529 = vmatpush1.xpose.msra.mxu0 %v171_v10  ;;  %v93_v49 = vld [vmem:[#allocation2 + $0x1b0] sm:$0xff]  ;;  %v191_v50 = vld [vmem:[#allocation5 + $0x1c0] sm:$0x3f]  ;;  %v96_v52 = vld [vmem:[#allocation2 + $0x1c8] sm:$0xff] }
  0x40   :  { %1599 = vmatpush1.xpose.msra.mxu1 %v173_v11  ;;  %1562 = vmatprep.mubr.f32.mxu0 %v76_v12  ;;  %v193_v51 = vld [vmem:[#allocation5 + $0x1d0] sm:$0x3f]  ;;  %v98_v53 = vld [vmem:[#allocation2 + $0x1d8] sm:$0xff]  ;;  %v196_v54 = vld [vmem:[#allocation5 + $0x1e8] sm:$0x3f] }
  0x41   :  { %1632 = vmatprep.mubr.f32.mxu1 %v78_v13  ;;  %1668 = vmatprep.subr.mxu0 %v176_v14  ;;  %v198_v55 = vld [vmem:[#allocation5 + $0x1f8] sm:$0x3f]  ;;  %v95_v56 = vld [vmem:[#allocation2 + $0x1c0] sm:$0xff]  ;;  %v97_v57 = vld [vmem:[#allocation2 + $0x1d0] sm:$0xff] }
  0x42   :  { %1738 = vmatprep.subr.mxu1 %v178_v15  ;;  %1563 = vmatmul.mubr.f32.vlgmr.msra.gmra.mxu0 %v75_v16  ;;  %v195_v58 = vld [vmem:[#allocation5 + $0x1e0] sm:$0x3f]  ;;  %v197_v59 = vld [vmem:[#allocation5 + $0x1f0] sm:$0x3f]  ;;  %v100_v60 = vld [vmem:[#allocation2 + $0x1e8] sm:$0xff] }
  0x43   :  { %1633 = vmatmul.mubr.f32.vlgmr.msra.gmra.mxu1 %v77_v17  ;;  %1669 = vmatpush1.xpose.msra.mxu0 %v175_v18  ;;  %v102_v61 = vld [vmem:[#allocation2 + $0x1f8] sm:$0xff]  ;;  %v200_v62 = vld [vmem:[#allocation5 + $0x208] sm:$0x3f]  ;;  %v99_v0 = vld [vmem:[#allocation2 + $0x1e0] sm:$0xff] }
  0x44   :  { %1739 = vmatpush1.xpose.msra.mxu1 %v177_v19  ;;  %1702 = vmatprep.mubr.f32.mxu0 %v80_v20  ;;  %v202_v63 = vld [vmem:[#allocation5 + $0x218] sm:$0x3f]  ;;  %v101_v1 = vld [vmem:[#allocation2 + $0x1f0] sm:$0xff]  ;;  %v199_v2 = vld [vmem:[#allocation5 + $0x200] sm:$0x3f] }
  0x45   :  { %1772 = vmatprep.mubr.f32.mxu1 %v82_v21  ;;  %1808 = vmatprep.subr.mxu0 %v180_v22  ;;  %v201_v3 = vld [vmem:[#allocation5 + $0x210] sm:$0x3f]  ;;  %v104_v4 = vld [vmem:[#allocation2 + $0x208] sm:$0xff]  ;;  %v106_v5 = vld [vmem:[#allocation2 + $0x218] sm:$0xff] }
  0x46   :  { %1878 = vmatprep.subr.mxu1 %v182_v23  ;;  %1703 = vmatmul.mubr.f32.vlgmr.msra.gmra.mxu0 %v79_v24  ;;  %v204_v6 = vld [vmem:[#allocation5 + $0x228] sm:$0x3f]  ;;  %v206_v7 = vld [vmem:[#allocation5 + $0x238] sm:$0x3f]  ;;  %v103_v8 = vld [vmem:[#allocation2 + $0x200] sm:$0xff] }
  0x47   :  { %1773 = vmatmul.mubr.f32.vlgmr.msra.gmra.mxu1 %v81_v25  ;;  %1809 = vmatpush1.xpose.msra.mxu0 %v179_v26  ;;  %v105_v9 = vld [vmem:[#allocation2 + $0x210] sm:$0xff]  ;;  %v203_v10 = vld [vmem:[#allocation5 + $0x220] sm:$0x3f]  ;;  %v108_v12 = vld [vmem:[#allocation2 + $0x228] sm:$0xff] }
  0x48   :  { %1879 = vmatpush1.xpose.msra.mxu1 %v181_v27  ;;  %1842 = vmatprep.mubr.f32.mxu0 %v84_v28  ;;  %v205_v11 = vld [vmem:[#allocation5 + $0x230] sm:$0x3f]  ;;  %v110_v13 = vld [vmem:[#allocation2 + $0x238] sm:$0xff]  ;;  %v208_v14 = vld [vmem:[#allocation5 + $0x248] sm:$0x3f] }
  0x49   :  { %1912 = vmatprep.mubr.f32.mxu1 %v86_v29  ;;  %1948 = vmatprep.subr.mxu0 %v184_v30  ;;  %v210_v15 = vld [vmem:[#allocation5 + $0x258] sm:$0x3f]  ;;  %v107_v16 = vld [vmem:[#allocation2 + $0x220] sm:$0xff]  ;;  %v109_v17 = vld [vmem:[#allocation2 + $0x230] sm:$0xff] }
  0x4a   :  { %2018 = vmatprep.subr.mxu1 %v186_v31  ;;  %1843 = vmatmul.mubr.f32.vlgmr.msra.gmra.mxu0 %v83_v32  ;;  %v207_v18 = vld [vmem:[#allocation5 + $0x240] sm:$0x3f]  ;;  %v209_v19 = vld [vmem:[#allocation5 + $0x250] sm:$0x3f]  ;;  %v112_v20 = vld [vmem:[#allocation2 + $0x248] sm:$0xff] }
  0x4b   :  { %1913 = vmatmul.mubr.f32.vlgmr.msra.gmra.mxu1 %v85_v33  ;;  %1949 = vmatpush1.xpose.msra.mxu0 %v183_v34  ;;  %v114_v21 = vld [vmem:[#allocation2 + $0x258] sm:$0xff]  ;;  %v212_v22 = vld [vmem:[#allocation5 + $0x268] sm:$0x3f]  ;;  %v111_v24 = vld [vmem:[#allocation2 + $0x240] sm:$0xff] }
  0x4c   :  { %2019 = vmatpush1.xpose.msra.mxu1 %v185_v35  ;;  %1982 = vmatprep.mubr.f32.mxu0 %v88_v36  ;;  %v214_v23 = vld [vmem:[#allocation5 + $0x278] sm:$0x3f]  ;;  %v113_v25 = vld [vmem:[#allocation2 + $0x250] sm:$0xff]  ;;  %v211_v26 = vld [vmem:[#allocation5 + $0x260] sm:$0x3f] }
  0x4d   :  { %2052 = vmatprep.mubr.f32.mxu1 %v90_v37  ;;  %2088 = vmatprep.subr.mxu0 %v188_v38  ;;  %v213_v27 = vld [vmem:[#allocation5 + $0x270] sm:$0x3f]  ;;  %v116_v28 = vld [vmem:[#allocation2 + $0x268] sm:$0xff]  ;;  %v118_v29 = vld [vmem:[#allocation2 + $0x278] sm:$0xff] }
  0x4e   :  { %2158 = vmatprep.subr.mxu1 %v190_v39  ;;  %1983 = vmatmul.mubr.f32.vlgmr.msra.gmra.mxu0 %v87_v40  ;;  %v216_v30 = vld [vmem:[#allocation5 + $0x288] sm:$0x3f]  ;;  %v218_v31 = vld [vmem:[#allocation5 + $0x298] sm:$0x3f]  ;;  %v115_v32 = vld [vmem:[#allocation2 + $0x260] sm:$0xff] }
  0x4f   :  { %2053 = vmatmul.mubr.f32.vlgmr.msra.gmra.mxu1 %v89_v41  ;;  %2089 = vmatpush1.xpose.msra.mxu0 %v187_v42  ;;  %v117_v33 = vld [vmem:[#allocation2 + $0x270] sm:$0xff]  ;;  %v215_v34 = vld [vmem:[#allocation5 + $0x280] sm:$0x3f]  ;;  %v120_v36 = vld [vmem:[#allocation2 + $0x288] sm:$0xff] }
  0x50   :  { %2159 = vmatpush1.xpose.msra.mxu1 %v189_v43  ;;  %2122 = vmatprep.mubr.f32.mxu0 %v92_v44  ;;  %v217_v35 = vld [vmem:[#allocation5 + $0x290] sm:$0x3f]  ;;  %v122_v37 = vld [vmem:[#allocation2 + $0x298] sm:$0xff]  ;;  %v220_v38 = vld [vmem:[#allocation5 + $0x2a8] sm:$0x3f] }
  0x51   :  { %2192 = vmatprep.mubr.f32.mxu1 %v94_v45  ;;  %2228 = vmatprep.subr.mxu0 %v192_v46  ;;  %v222_v39 = vld [vmem:[#allocation5 + $0x2b8] sm:$0x3f]  ;;  %v119_v40 = vld [vmem:[#allocation2 + $0x280] sm:$0xff]  ;;  %v121_v41 = vld [vmem:[#allocation2 + $0x290] sm:$0xff] }
  0x52   :  { %2298 = vmatprep.subr.mxu1 %v194_v47  ;;  %2123 = vmatmul.mubr.f32.vlgmr.msra.gmra.mxu0 %v91_v48  ;;  %v219_v42 = vld [vmem:[#allocation5 + $0x2a0] sm:$0x3f]  ;;  %v221_v43 = vld [vmem:[#allocation5 + $0x2b0] sm:$0x3f]  ;;  %v124_v44 = vld [vmem:[#allocation2 + $0x2a8] sm:$0xff] }
  0x53   :  { %2193 = vmatmul.mubr.f32.vlgmr.msra.gmra.mxu1 %v93_v49  ;;  %2229 = vmatpush1.xpose.msra.mxu0 %v191_v50  ;;  %v126_v45 = vld [vmem:[#allocation2 + $0x2b8] sm:$0xff]  ;;  %v224_v46 = vld [vmem:[#allocation5 + $0x2c8] sm:$0x3f]  ;;  %v123_v48 = vld [vmem:[#allocation2 + $0x2a0] sm:$0xff] }
  0x54   :  { %2299 = vmatpush1.xpose.msra.mxu1 %v193_v51  ;;  %2262 = vmatprep.mubr.f32.mxu0 %v96_v52  ;;  %v226_v47 = vld [vmem:[#allocation5 + $0x2d8] sm:$0x3f]  ;;  %v125_v49 = vld [vmem:[#allocation2 + $0x2b0] sm:$0xff]  ;;  %v223_v50 = vld [vmem:[#allocation5 + $0x2c0] sm:$0x3f] }
  0x55   :  { %2332 = vmatprep.mubr.f32.mxu1 %v98_v53  ;;  %2368 = vmatprep.subr.mxu0 %v196_v54  ;;  %v225_v51 = vld [vmem:[#allocation5 + $0x2d0] sm:$0x3f]  ;;  %v128_v52 = vld [vmem:[#allocation2 + $0x2c8] sm:$0xff]  ;;  %v130_v53 = vld [vmem:[#allocation2 + $0x2d8] sm:$0xff] }
  0x56   :  { %2438 = vmatprep.subr.mxu1 %v198_v55  ;;  %2263 = vmatmul.mubr.f32.vlgmr.msra.gmra.mxu0 %v95_v56  ;;  %v228_v54 = vld [vmem:[#allocation5 + $0x2e8] sm:$0x3f]  ;;  %v230_v55 = vld [vmem:[#allocation5 + $0x2f8] sm:$0x3f]  ;;  %v127_v56 = vld [vmem:[#allocation2 + $0x2c0] sm:$0xff] }
  0x57   :  { %2333 = vmatmul.mubr.f32.vlgmr.msra.gmra.mxu1 %v97_v57  ;;  %2369 = vmatpush1.xpose.msra.mxu0 %v195_v58  ;;  %v129_v57 = vld [vmem:[#allocation2 + $0x2d0] sm:$0xff]  ;;  %v227_v58 = vld [vmem:[#allocation5 + $0x2e0] sm:$0x3f] }
  0x58   :  { %2439 = vmatpush1.xpose.msra.mxu1 %v197_v59  ;;  %2402 = vmatprep.mubr.f32.mxu0 %v100_v60  ;;  %v229_v59 = vld [vmem:[#allocation5 + $0x2f0] sm:$0x3f]  ;;  %v132_v60 = vld [vmem:[#allocation2 + $0x2e8] sm:$0xff] }
  0x59   :  { %2472 = vmatprep.mubr.f32.mxu1 %v102_v61  ;;  %2508 = vmatprep.subr.mxu0 %v200_v62  ;;  %v134_v61 = vld [vmem:[#allocation2 + $0x2f8] sm:$0xff]  ;;  %v131_v62 = vld [vmem:[#allocation2 + $0x2e0] sm:$0xff] }
  0x5a   :  { %2578 = vmatprep.subr.mxu1 %v202_v63  ;;  %2403 = vmatmul.mubr.f32.vlgmr.msra.gmra.mxu0 %v99_v0  ;;  %v133_v63 = vld [vmem:[#allocation2 + $0x2f0] sm:$0xff]  ;;  %v3616_v0 = vld [vmem:[%s3723_s2] ss:$0 sm:$0xff]  ;;  %s3688_s2 = smov [#allocation7]  }
  0x5b   :  { %2473 = vmatmul.mubr.f32.vlgmr.msra.gmra.mxu1 %v101_v1  ;;  %2509 = vmatpush1.xpose.msra.mxu0 %v199_v2  ;;  %s3606_s22 = sshll.u32 %s3688_s2, 4  ;;  %s3607_s22 = int_to_ptr.vmem [resolvable:$true] %s3606_s22 }
  0x5c   :  { %2579 = vmatpush1.xpose.msra.mxu1 %v201_v3  ;;  %2542 = vmatprep.mubr.f32.mxu0 %v104_v4  ;;  %s3660_s23 = scalar_lea.vmem %s3607_s22, 128  ;;  %p3665_p11 = scmp.lt.s32.totalorder %s3607_s22, %s3607_s22 }
  0x5d   :  { %2612 = vmatprep.mubr.f32.mxu1 %v106_v5  ;;  %2648 = vmatprep.subr.mxu0 %v204_v6  ;;  %p3661_p10 = scmp.ne.s32.totalorder %s3607_s22, %s3660_s23  ;;  %p3666_p12 = scmp.lt.s32.totalorder %s3660_s23, %s3660_s23 }
  0x5e   :  { %2718 = vmatprep.subr.mxu1 %v206_v7  ;;  %2543 = vmatmul.mubr.f32.vlgmr.msra.gmra.mxu0 %v103_v8 }
  0x5f   :  { %2613 = vmatmul.mubr.f32.vlgmr.msra.gmra.mxu1 %v105_v9  ;;  %2649 = vmatpush1.xpose.msra.mxu0 %v203_v10  ;;  %p3667_p13 = por %p3666_p12, %p3665_p11 }
  0x60   :  { %2719 = vmatpush1.xpose.msra.mxu1 %v205_v11  ;;  %2682 = vmatprep.mubr.f32.mxu0 %v108_v12 }
  0x61   :  { %2752 = vmatprep.mubr.f32.mxu1 %v110_v13  ;;  %2788 = vmatprep.subr.mxu0 %v208_v14  ;;  %p3668_p0 = pnand %p3667_p13, %p3661_p10 }
  0x62   :  { %2858 = vmatprep.subr.mxu1 %v210_v15  ;;  %2683 = vmatmul.mubr.f32.vlgmr.msra.gmra.mxu0 %v107_v16 }
  0x63   :  { %2753 = vmatmul.mubr.f32.vlgmr.msra.gmra.mxu1 %v109_v17  ;;  %2789 = vmatpush1.xpose.msra.mxu0 %v207_v18 }
  0x64   :  { %2859 = vmatpush1.xpose.msra.mxu1 %v209_v19  ;;  %2822 = vmatprep.mubr.f32.mxu0 %v112_v20 }
  0x65   :  { %2892 = vmatprep.mubr.f32.mxu1 %v114_v21  ;;  %2928 = vmatprep.subr.mxu0 %v212_v22 }
  0x66   :  { %2998 = vmatprep.subr.mxu1 %v214_v23  ;;  %2823 = vmatmul.mubr.f32.vlgmr.msra.gmra.mxu0 %v111_v24 }
  0x67   :  { %2893 = vmatmul.mubr.f32.vlgmr.msra.gmra.mxu1 %v113_v25  ;;  %2929 = vmatpush1.xpose.msra.mxu0 %v211_v26 }
  0x68   :  { %2999 = vmatpush1.xpose.msra.mxu1 %v213_v27  ;;  %2962 = vmatprep.mubr.f32.mxu0 %v116_v28 }
  0x69   :  { %3032 = vmatprep.mubr.f32.mxu1 %v118_v29  ;;  %3068 = vmatprep.subr.mxu0 %v216_v30 }
  0x6a   :  { %3138 = vmatprep.subr.mxu1 %v218_v31  ;;  %2963 = vmatmul.mubr.f32.vlgmr.msra.gmra.mxu0 %v115_v32 }
  0x6b   :  { %3033 = vmatmul.mubr.f32.vlgmr.msra.gmra.mxu1 %v117_v33  ;;  %3069 = vmatpush1.xpose.msra.mxu0 %v215_v34 }
  0x6c   :  { %3139 = vmatpush1.xpose.msra.mxu1 %v217_v35  ;;  %3102 = vmatprep.mubr.f32.mxu0 %v120_v36 }
  0x6d   :  { %3172 = vmatprep.mubr.f32.mxu1 %v122_v37  ;;  %3208 = vmatprep.subr.mxu0 %v220_v38 }
  0x6e   :  { %3278 = vmatprep.subr.mxu1 %v222_v39  ;;  %3103 = vmatmul.mubr.f32.vlgmr.msra.gmra.mxu0 %v119_v40 }
  0x6f   :  { %3173 = vmatmul.mubr.f32.vlgmr.msra.gmra.mxu1 %v121_v41  ;;  %3209 = vmatpush1.xpose.msra.mxu0 %v219_v42 }
  0x70   :  { %3279 = vmatpush1.xpose.msra.mxu1 %v221_v43  ;;  %3242 = vmatprep.mubr.f32.mxu0 %v124_v44 }
  0x71   :  { %3312 = vmatprep.mubr.f32.mxu1 %v126_v45  ;;  %3348 = vmatprep.subr.mxu0 %v224_v46 }
  0x72   :  { %3418 = vmatprep.subr.mxu1 %v226_v47  ;;  %3243 = vmatmul.mubr.f32.vlgmr.msra.gmra.mxu0 %v123_v48 }
  0x73   :  { %3313 = vmatmul.mubr.f32.vlgmr.msra.gmra.mxu1 %v125_v49  ;;  %3349 = vmatpush1.xpose.msra.mxu0 %v223_v50 }
  0x74   :  { %3419 = vmatpush1.xpose.msra.mxu1 %v225_v51  ;;  %3382 = vmatprep.mubr.f32.mxu0 %v128_v52 }
  0x75   :  { %3452 = vmatprep.mubr.f32.mxu1 %v130_v53  ;;  %3488 = vmatprep.subr.mxu0 %v228_v54 }
  0x76   :  { %3558 = vmatprep.subr.mxu1 %v230_v55  ;;  %3383 = vmatmul.mubr.f32.vlgmr.msra.gmra.mxu0 %v127_v56 }
  0x77   :  { %3453 = vmatmul.mubr.f32.vlgmr.msra.gmra.mxu1 %v129_v57  ;;  %3489 = vmatpush1.xpose.msra.mxu0 %v227_v58 }
  0x78   :  { %3559 = vmatpush1.xpose.msra.mxu1 %v229_v59  ;;  %3522 = vmatprep.mubr.f32.mxu0 %v132_v60 }
  0x79   :  { %3592 = vmatprep.mubr.f32.mxu1 %v134_v61 }
  0x7a   :  { %3523 = vmatmul.mubr.f32.vlgmr.msra.gmra.mxu0 %v131_v62 }
  0x7b   :  { %3593 = vmatmul.mubr.f32.vlgmr.msra.gmra.mxu1 %v133_v63 }
  0xde   :  { %v304_v1 = vpop.f32.mrf.mxu0 }
  0xdf   :  { %v374_v2 = vpop.f32.mrf.mxu1  ;;  %v305_v3 = vadd.f32 %v3616_v0, %v304_v1 }
  0xe0   :  { %v306_v4 = vpop.f32.mrf.mxu0 }
  0xe1   :  { %v376_v5 = vpop.f32.mrf.mxu1  ;;  %v375_v6 = vadd.f32 %v374_v2, %v305_v3 }
  0xe2   :  { %v444_v7 = vpop.f32.mrf.mxu0 }
  0xe3   :  { %v514_v8 = vpop.f32.mrf.mxu1  ;;  %v445_v9 = vadd.f32 %v444_v7, %v375_v6 }
  0xe4   :  { %v446_v10 = vpop.f32.mrf.mxu0 }
  0xe5   :  { %v516_v11 = vpop.f32.mrf.mxu1  ;;  %v515_v12 = vadd.f32 %v514_v8, %v445_v9 }
  0xe6   :  { %v584_v13 = vpop.f32.mrf.mxu0 }
  0xe7   :  { %v654_v14 = vpop.f32.mrf.mxu1  ;;  %v585_v15 = vadd.f32 %v584_v13, %v515_v12 }
  0xe8   :  { %v586_v16 = vpop.f32.mrf.mxu0 }
  0xe9   :  { %v656_v17 = vpop.f32.mrf.mxu1  ;;  %v655_v18 = vadd.f32 %v654_v14, %v585_v15 }
  0xea   :  { %v724_v19 = vpop.f32.mrf.mxu0 }
  0xeb   :  { %v794_v20 = vpop.f32.mrf.mxu1  ;;  %v725_v21 = vadd.f32 %v724_v19, %v655_v18 }
  0xec   :  { %v726_v22 = vpop.f32.mrf.mxu0 }
  0xed   :  { %v796_v23 = vpop.f32.mrf.mxu1  ;;  %v795_v24 = vadd.f32 %v794_v20, %v725_v21 }
  0xee   :  { %v864_v25 = vpop.f32.mrf.mxu0 }
  0xef   :  { %v934_v26 = vpop.f32.mrf.mxu1  ;;  %v865_v27 = vadd.f32 %v864_v25, %v795_v24 }
  0xf0   :  { %v866_v28 = vpop.f32.mrf.mxu0 }
  0xf1   :  { %v936_v29 = vpop.f32.mrf.mxu1  ;;  %v935_v30 = vadd.f32 %v934_v26, %v865_v27 }
  0xf2   :  { %v1004_v31 = vpop.f32.mrf.mxu0 }
  0xf3   :  { %v1074_v32 = vpop.f32.mrf.mxu1  ;;  %v1005_v33 = vadd.f32 %v1004_v31, %v935_v30 }
  0xf4   :  { %v1006_v34 = vpop.f32.mrf.mxu0 }
  0xf5   :  { %v1076_v35 = vpop.f32.mrf.mxu1  ;;  %v1075_v36 = vadd.f32 %v1074_v32, %v1005_v33 }
  0xf6   :  { %v1144_v37 = vpop.f32.mrf.mxu0 }
  0xf7   :  { %v1214_v38 = vpop.f32.mrf.mxu1  ;;  %v1145_v39 = vadd.f32 %v1144_v37, %v1075_v36 }
  0xf8   :  { %v1146_v40 = vpop.f32.mrf.mxu0 }
  0xf9   :  { %v1216_v41 = vpop.f32.mrf.mxu1  ;;  %v1215_v42 = vadd.f32 %v1214_v38, %v1145_v39 }
  0xfa   :  { %v1284_v43 = vpop.f32.mrf.mxu0 }
  0xfb   :  { %v1354_v44 = vpop.f32.mrf.mxu1  ;;  %v1285_v45 = vadd.f32 %v1284_v43, %v1215_v42 }
  0xfc   :  { %v1286_v46 = vpop.f32.mrf.mxu0 }
  0xfd   :  { %v1356_v47 = vpop.f32.mrf.mxu1  ;;  %v1355_v48 = vadd.f32 %v1354_v44, %v1285_v45 }
  0xfe   :  { %v1424_v49 = vpop.f32.mrf.mxu0 }
  0xff   :  { %v1494_v50 = vpop.f32.mrf.mxu1  ;;  %v1425_v51 = vadd.f32 %v1424_v49, %v1355_v48 }
 0x100   :  { %v1426_v52 = vpop.f32.mrf.mxu0 }
 0x101   :  { %v1496_v53 = vpop.f32.mrf.mxu1  ;;  %v1495_v54 = vadd.f32 %v1494_v50, %v1425_v51 }
 0x102   :  { %v1564_v55 = vpop.f32.mrf.mxu0 }
 0x103   :  { %v1634_v56 = vpop.f32.mrf.mxu1  ;;  %v1565_v57 = vadd.f32 %v1564_v55, %v1495_v54 }
 0x104   :  { %v1566_v58 = vpop.f32.mrf.mxu0 }
 0x105   :  { %v1636_v59 = vpop.f32.mrf.mxu1  ;;  %v1635_v60 = vadd.f32 %v1634_v56, %v1565_v57 }
 0x106   :  { %v1704_v61 = vpop.f32.mrf.mxu0 }
 0x107   :  { %v1774_v62 = vpop.f32.mrf.mxu1  ;;  %v1705_v63 = vadd.f32 %v1704_v61, %v1635_v60 }
 0x108   :  { %v1706_v0 = vpop.f32.mrf.mxu0 }
 0x109   :  { %v1776_v1 = vpop.f32.mrf.mxu1  ;;  %v1775_v2 = vadd.f32 %v1774_v62, %v1705_v63 }
 0x10a   :  { %v1844_v3 = vpop.f32.mrf.mxu0 }
 0x10b   :  { %v1914_v4 = vpop.f32.mrf.mxu1  ;;  %v1845_v5 = vadd.f32 %v1844_v3, %v1775_v2 }
 0x10c   :  { %v1846_v6 = vpop.f32.mrf.mxu0 }
 0x10d   :  { %v1916_v7 = vpop.f32.mrf.mxu1  ;;  %v1915_v8 = vadd.f32 %v1914_v4, %v1845_v5 }
 0x10e   :  { %v1984_v9 = vpop.f32.mrf.mxu0 }
 0x10f   :  { %v2054_v10 = vpop.f32.mrf.mxu1  ;;  %v1985_v11 = vadd.f32 %v1984_v9, %v1915_v8 }
 0x110   :  { %v1986_v12 = vpop.f32.mrf.mxu0 }
 0x111   :  { %v2056_v13 = vpop.f32.mrf.mxu1  ;;  %v2055_v14 = vadd.f32 %v2054_v10, %v1985_v11 }
 0x112   :  { %v2124_v15 = vpop.f32.mrf.mxu0 }
 0x113   :  { %v2194_v16 = vpop.f32.mrf.mxu1  ;;  %v2125_v17 = vadd.f32 %v2124_v15, %v2055_v14 }
 0x114   :  { %v2126_v18 = vpop.f32.mrf.mxu0 }
 0x115   :  { %v2196_v19 = vpop.f32.mrf.mxu1  ;;  %v2195_v20 = vadd.f32 %v2194_v16, %v2125_v17 }
 0x116   :  { %v2264_v21 = vpop.f32.mrf.mxu0 }
 0x117   :  { %v2334_v22 = vpop.f32.mrf.mxu1  ;;  %v2265_v23 = vadd.f32 %v2264_v21, %v2195_v20 }
 0x118   :  { %v2266_v24 = vpop.f32.mrf.mxu0 }
 0x119   :  { %v2336_v25 = vpop.f32.mrf.mxu1  ;;  %v2335_v26 = vadd.f32 %v2334_v22, %v2265_v23 }
 0x11a   :  { %v2404_v27 = vpop.f32.mrf.mxu0 }
 0x11b   :  { %v2474_v28 = vpop.f32.mrf.mxu1  ;;  %v2405_v29 = vadd.f32 %v2404_v27, %v2335_v26 }
 0x11c   :  { %v2406_v30 = vpop.f32.mrf.mxu0 }
 0x11d   :  { %v2476_v31 = vpop.f32.mrf.mxu1  ;;  %v2475_v32 = vadd.f32 %v2474_v28, %v2405_v29 }
 0x11e   :  { %v2544_v33 = vpop.f32.mrf.mxu0 }
 0x11f   :  { %v2614_v34 = vpop.f32.mrf.mxu1  ;;  %v2545_v35 = vadd.f32 %v2544_v33, %v2475_v32 }
 0x120   :  { %v2546_v36 = vpop.f32.mrf.mxu0 }
 0x121   :  { %v2616_v37 = vpop.f32.mrf.mxu1  ;;  %v2615_v38 = vadd.f32 %v2614_v34, %v2545_v35 }
 0x122   :  { %v2684_v39 = vpop.f32.mrf.mxu0 }
 0x123   :  { %v2754_v40 = vpop.f32.mrf.mxu1  ;;  %v2685_v41 = vadd.f32 %v2684_v39, %v2615_v38 }
 0x124   :  { %v2686_v42 = vpop.f32.mrf.mxu0 }
 0x125   :  { %v2756_v43 = vpop.f32.mrf.mxu1  ;;  %v2755_v44 = vadd.f32 %v2754_v40, %v2685_v41 }
 0x126   :  { %v2824_v45 = vpop.f32.mrf.mxu0 }
 0x127   :  { %v2894_v46 = vpop.f32.mrf.mxu1  ;;  %v2825_v47 = vadd.f32 %v2824_v45, %v2755_v44 }
 0x128   :  { %v2826_v48 = vpop.f32.mrf.mxu0 }
 0x129   :  { %v2896_v49 = vpop.f32.mrf.mxu1  ;;  %v2895_v50 = vadd.f32 %v2894_v46, %v2825_v47 }
 0x12a   :  { %v2964_v51 = vpop.f32.mrf.mxu0 }
 0x12b   :  { %v3034_v52 = vpop.f32.mrf.mxu1  ;;  %v2965_v53 = vadd.f32 %v2964_v51, %v2895_v50 }
 0x12c   :  { %v2966_v54 = vpop.f32.mrf.mxu0 }
 0x12d   :  { %v3036_v55 = vpop.f32.mrf.mxu1  ;;  %v3035_v56 = vadd.f32 %v3034_v52, %v2965_v53 }
 0x12e   :  { %v3104_v57 = vpop.f32.mrf.mxu0 }
 0x12f   :  { %v3174_v58 = vpop.f32.mrf.mxu1  ;;  %v3105_v59 = vadd.f32 %v3104_v57, %v3035_v56 }
 0x130   :  { %v3106_v60 = vpop.f32.mrf.mxu0 }
 0x131   :  { %v3176_v61 = vpop.f32.mrf.mxu1  ;;  %v3175_v62 = vadd.f32 %v3174_v58, %v3105_v59 }
 0x132   :  { %v3244_v63 = vpop.f32.mrf.mxu0 }
 0x133   :  { %v3314_v0 = vpop.f32.mrf.mxu1  ;;  %v3245_v1 = vadd.f32 %v3244_v63, %v3175_v62 }
 0x134   :  { %v3246_v2 = vpop.f32.mrf.mxu0 }
 0x135   :  { %v3316_v3 = vpop.f32.mrf.mxu1  ;;  %v3315_v4 = vadd.f32 %v3314_v0, %v3245_v1 }
 0x136   :  { %v3384_v5 = vpop.f32.mrf.mxu0 }
 0x137   :  { %v3454_v6 = vpop.f32.mrf.mxu1  ;;  %v3385_v7 = vadd.f32 %v3384_v5, %v3315_v4 }
 0x138   :  { %v3386_v8 = vpop.f32.mrf.mxu0 }
 0x139   :  { %v3456_v9 = vpop.f32.mrf.mxu1  ;;  %v3455_v10 = vadd.f32 %v3454_v6, %v3385_v7 }
 0x13a   :  { %v3524_v11 = vpop.f32.mrf.mxu0 }
 0x13b   :  { %v3594_v12 = vpop.f32.mrf.mxu1  ;;  %v3525_v13 = vadd.f32 %v3524_v11, %v3455_v10 }
 0x13c   :  { %v3526_v14 = vpop.f32.mrf.mxu0 }
 0x13d   :  { %v3596_v15 = vpop.f32.mrf.mxu1  ;;  %v3595_v16 = vadd.f32 %v3594_v12, %v3525_v13 }
 0x13f   :  { %3599 = vst.msk [vmem:[#allocation7] sm:$0xff] %vm3598_vm0, %v3595_v16 }
 0x140   :  { %3671 = shalt.err (!%p3668_p0)
}
 0x141   :  { %3609 = dma.vmem_to_hbm [thread:$0]  %s3607_s22, 128, %s3724_s3, [#allocation4]  }
 0x142   :  { %3684 = dma.done.wait [#allocation4], 128  }
 0x143   :  { %3685 = vsyncadd [#allocation4], 4294967168 }
 0x144   :  { %3613 = vsyncpa [#allocation3], 1 }
 0x145   :  { %3614 = vsyncpa [#allocation6], 1 }
 0x146   :  { %3615 = vsyncpa [#allocation4], 1 }

</bundles_post_ra>
